<compile_context>
chip_gen: v7x
topology: tpu7x:2x2x1
jax: 0.10.0
libtpu: 0.0.40
codegen_flags: <defaults>
</compile_context>

<pallas_src>
import functools

import jax
import jax.numpy as jnp
from jax.experimental import pallas as pl
from jax.experimental.pallas import tpu as pltpu


def _fused_forecaster_kernel(s_ref, w_ref, b_ref, out_ref):
    # s_hat = s_packed @ W_block + b_tiled  (one MXU pass + one VPU bias add)
    acc = jnp.dot(s_ref[...], w_ref[...], preferred_element_type=jnp.float32)
    out_ref[...] = (acc + b_ref[...]).astype(out_ref.dtype)


def _round_up(x, m):
    return ((x + m - 1) // m) * m


@functools.partial(jax.jit, static_argnames=("tile_rows",))
def simple_forecaster(s, wA, bA, wB, bB, *, tile_rows=16384):
    """Forward pass of SimpleForecaster.

    s : (B, input_dim)        input_dim = H * s_dim   (f32 or bf16)
    wA: (input_dim, z_dim)    bA: (1, z_dim)
    wB: (z_dim, output_dim)   bB: (1, output_dim)
    returns (B, output_dim) in float32.
    """
    B, in_dim = s.shape
    out_dim = wB.shape[1]

    # ---- algebraic fusion of the two affine layers (no nonlinearity) -------
    w_fused = jnp.dot(wA, wB, preferred_element_type=jnp.float32).astype(jnp.float32)
    b_fused = (jnp.dot(bA, wB, preferred_element_type=jnp.float32) + bB).astype(jnp.float32)

    # ---- lane packing: (B, in_dim) -> (B/pack, 128) + block-diag weight ----
    if in_dim == out_dim and 128 % in_dim == 0:
        pack = 128 // in_dim                      # 8 for in_dim = out_dim = 16
    else:
        pack = 1                                  # fallback: correct, lane-sparse
    w_block = jnp.kron(jnp.eye(pack, dtype=jnp.float32), w_fused)  # (pack*in, pack*out)
    b_tiled = jnp.tile(b_fused, (1, pack))                         # (1, pack*out)
    in_w, out_w = pack * in_dim, pack * out_dim

    # ---- batch tiling in packed rows ----------------------------------------
    pr_raw = -(-B // pack)                        # packed rows needed
    pr = _round_up(max(pr_raw, 8), 8)             # sublane-aligned packed rows
    target_pr = max(8, tile_rows // pack)         # ~1 MiB f32 per (target_pr,128) block
    min_steps = 2 if pr >= 16 else 1              # keep >=2 grid steps for v7x megacore
    steps = max(min_steps, -(-pr // target_pr))
    tm_pr = _round_up(-(-pr // steps), 8)         # tile derived from step count ->
    padded_pr = steps * tm_pr                     # bounded padding waste (<= steps*8 rows)
    padded_b = padded_pr * pack

    if padded_b != B:
        s = jnp.pad(s, ((0, padded_b - B), (0, 0)))
    s_packed = s.reshape(padded_pr, in_w)         # free row-major reshape (no copy)

    out_packed = pl.pallas_call(
        _fused_forecaster_kernel,
        out_shape=jax.ShapeDtypeStruct((padded_pr, out_w), jnp.float32),
        grid_spec=pltpu.PrefetchScalarGridSpec(
            num_scalar_prefetch=0,
            grid=(steps,),
            in_specs=[
                # s: lane-dense batch tiles, double-buffered by the pipeline
                pl.BlockSpec((tm_pr, in_w), lambda i: (i, 0)),
                # block-diagonal fused weight / tiled bias: VMEM-resident for
                # all grid steps (constant index_map, ~64 KiB + 0.5 KiB)
                pl.BlockSpec((in_w, out_w), lambda i: (0, 0)),
                pl.BlockSpec((1, out_w), lambda i: (0, 0)),
            ],
            out_specs=pl.BlockSpec((tm_pr, out_w), lambda i: (i, 0)),
        ),
        compiler_params=pltpu.CompilerParams(
            # batch tiles are independent -> shard across both TCs on v7x
            dimension_semantics=("parallel",),
        ),
    )(s_packed, w_block, b_tiled)

    out = out_packed.reshape(padded_b, out_dim)   # free reshape back
    return out[:B]


if __name__ == "__main__":
    # model_params: H=4, W=4, s_dim=4, z_dim=32  =>  input_dim=16, output_dim=16
    H, W, s_dim, z_dim = 4, 4, 4, 32
    input_dim = H * s_dim
    output_dim = W * s_dim

    key = jax.random.PRNGKey(0)
    k_s, k_s2, k_s3, k_wA, k_bA, k_wB, k_bB = jax.random.split(key, 7)

    # Deterministic parameter init (uniform, PyTorch default Linear init scale).
    limA = 1.0 / jnp.sqrt(input_dim)
    limB = 1.0 / jnp.sqrt(z_dim)
    wA = jax.random.uniform(k_wA, (input_dim, z_dim), minval=-limA, maxval=limA, dtype=jnp.float32)
    bA = jax.random.uniform(k_bA, (1, z_dim), minval=-limA, maxval=limA, dtype=jnp.float32)
    wB = jax.random.uniform(k_wB, (z_dim, output_dim), minval=-limB, maxval=limB, dtype=jnp.float32)
    bB = jax.random.uniform(k_bB, (1, output_dim), minval=-limB, maxval=limB, dtype=jnp.float32)

    def ref_fwd(x):
        return (x @ wA + bA) @ wB + bB

    # small batch (single grid step), odd batch (padding path), and a batch
    # large enough to exercise the multi-step pipelined grid.
    for batch, k in ((8, k_s), (1037, k_s2), (16500, k_s3)):
        s = jax.random.normal(k, (batch, input_dim), dtype=jnp.float32)
        out = jax.block_until_ready(simple_forecaster(s, wA, bA, wB, bB))
        assert out.shape == (batch, output_dim)
        assert jnp.allclose(out, ref_fwd(s), atol=1e-4, rtol=1e-4)

    print("KERNEL_OK")
</pallas_src>

<mosaic_0001>
module attributes {stable_mosaic.version = 11 : i64} {
  func.func @_fused_forecaster_kernel(%arg0: i32, %arg1: memref<8x128xf32, #tpu.memory_space<vmem>>, %arg2: memref<128x128xf32, #tpu.memory_space<vmem>>, %arg3: memref<1x128xf32, #tpu.memory_space<vmem>>, %arg4: memref<8x128xf32, #tpu.memory_space<vmem>>) attributes {dimension_semantics = [#tpu.dimension_semantics<parallel>], iteration_bounds = array<i64: 1>, scalar_prefetch = 0 : i64, scratch_operands = 0 : i64, tpu.core_type = #tpu.core_type<tc>, window_params = [{transform_indices = @transform_0, window_bounds = array<i64: 8, 128>}, {pipeline_mode = #tpu.pipeline_mode<synchronous>, transform_indices = @transform_1, window_bounds = array<i64: 128, 128>}, {pipeline_mode = #tpu.pipeline_mode<synchronous>, transform_indices = @transform_2, window_bounds = array<i64: 1, 128>}, {transform_indices = @transform_3, window_bounds = array<i64: 8, 128>}]} {
    %c0 = arith.constant 0 : index
    %c0_0 = arith.constant 0 : index
    %0 = vector.load %arg1[%c0, %c0_0] : memref<8x128xf32, #tpu.memory_space<vmem>>, vector<8x128xf32>
    %c0_1 = arith.constant 0 : index
    %c0_2 = arith.constant 0 : index
    %1 = vector.load %arg2[%c0_1, %c0_2] : memref<128x128xf32, #tpu.memory_space<vmem>>, vector<128x128xf32>
    %cst = arith.constant dense<0.000000e+00> : vector<8x128xf32>
    %2 = tpu.matmul %0, %1, %cst {dimension_numbers = #tpu.dot_dimension_numbers<[1], [0], [0], [1], [0, 0, 1, 1], [], []>} : vector<8x128xf32>, vector<128x128xf32>, vector<8x128xf32> -> vector<8x128xf32>
    %c0_3 = arith.constant 0 : index
    %c0_4 = arith.constant 0 : index
    %3 = vector.load %arg3[%c0_3, %c0_4] : memref<1x128xf32, #tpu.memory_space<vmem>>, vector<1x128xf32>
    %4 = vector.broadcast %3 : vector<1x128xf32> to vector<8x128xf32>
    %5 = arith.addf %2, %4 : vector<8x128xf32>
    %c0_5 = arith.constant 0 : index
    %c0_6 = arith.constant 0 : index
    %6 = vector.load %arg4[%c0_5, %c0_6] : memref<8x128xf32, #tpu.memory_space<vmem>>, vector<8x128xf32>
    tpu.vector_store %arg4[%c0_5, %c0_6], %5 {strides = array<i32>} : memref<8x128xf32, #tpu.memory_space<vmem>>, vector<8x128xf32>,
    return
  }
  func.func @transform_0(%arg0: i32) -> (i32, i32) {
    %c0_i32 = arith.constant 0 : i32
    %c0_i32_0 = arith.constant 0 : i32
    return %arg0, %c0_i32 : i32, i32
  }
  func.func @transform_1(%arg0: i32) -> (i32, i32) {
    %c0_i32 = arith.constant 0 : i32
    %c0_i32_0 = arith.constant 0 : i32
    %c0_i32_1 = arith.constant 0 : i32
    return %c0_i32, %c0_i32_0 : i32, i32
  }
  func.func @transform_2(%arg0: i32) -> (i32, i32) {
    %c0_i32 = arith.constant 0 : i32
    %c0_i32_0 = arith.constant 0 : i32
    %c0_i32_1 = arith.constant 0 : i32
    return %c0_i32, %c0_i32_0 : i32, i32
  }
  func.func @transform_3(%arg0: i32) -> (i32, i32) {
    %c0_i32 = arith.constant 0 : i32
    %c0_i32_0 = arith.constant 0 : i32
    return %arg0, %c0_i32 : i32, i32
  }
}

</mosaic_0001>

<bundles_post_ra>
// kernel: simple_forecaster.1
= control target key start
LH: loop header
LB: loop body
LE: loop exit
PB: predicated region body
PF: predicated region fallthrough
CT: control target
= control target key end

     0   :  { %v193_v0 = vmov 0.0|0.0   ;;  %vm194_vm0 = vmmov 0   ;;  %v195_v4 = vmov 0.0   ;;  %s273_s1 = inlined_call_operand.vmem [shape: f32[128,128], index: 1, kind: input, shape index: {}]   ;;  %s274_s0 = inlined_call_operand.vmem [shape: f32[8,128], index: 0, kind: input, shape index: {}]   ;;  %s275_s2 = inlined_call_operand.vmem [shape: f32[1,128], index: 2, kind: input, shape index: {}]   ;;  %s276_s3 = inlined_call_operand.vmem [shape: f32[8,128], index: 3, kind: output, shape index: {}]  }
   0x1   :  { %166 = vmatprep.subr.bf16.mxu0 %v193_v0  ;;  %v15_v1 = vld [vmem:[%s273_s1] sm:$0xff]  ;;  %v16_v2 = vld [vmem:[%s273_s1 + $0x8] sm:$0xff]  ;;  %v17_v3 = vld [vmem:[%s273_s1 + $0x10] sm:$0xff]  ;;  %163 = vmatprep.mubr.msk.f32.mxu0 %vm194_vm0, %v195_v4 }
   0x2   :  { %v167_v5 = vpack.c.bf16 %v16_v2, %v15_v1  ;;  %v18_v6 = vld [vmem:[%s273_s1 + $0x18] sm:$0xff]  ;;  %v19_v8 = vld [vmem:[%s273_s1 + $0x20] sm:$0xff]  ;;  %v20_v9 = vld [vmem:[%s273_s1 + $0x28] sm:$0xff] }
   0x3   :  { %v170_v7 = vpack.c.bf16 %v18_v6, %v17_v3  ;;  %v173_v10 = vpack.c.bf16 %v20_v9, %v19_v8  ;;  %v21_v11 = vld [vmem:[%s273_s1 + $0x30] sm:$0xff]  ;;  %v22_v12 = vld [vmem:[%s273_s1 + $0x38] sm:$0xff]  ;;  %v23_v14 = vld [vmem:[%s273_s1 + $0x40] sm:$0xff] }
   0x4   :  { %168 = vmatpush3.bf16.msra.mxu0 %v167_v5  ;;  %v176_v13 = vpack.c.bf16 %v22_v12, %v21_v11  ;;  %v24_v15 = vld [vmem:[%s273_s1 + $0x48] sm:$0xff]  ;;  %v25_v17 = vld [vmem:[%s273_s1 + $0x50] sm:$0xff]  ;;  %v26_v18 = vld [vmem:[%s273_s1 + $0x58] sm:$0xff] }
   0x5   :  { %169 = vmatprep.subr.bf16.mxu0 %v193_v0  ;;  %v179_v16 = vpack.c.bf16 %v24_v15, %v23_v14  ;;  %v182_v19 = vpack.c.bf16 %v26_v18, %v25_v17  ;;  %v27_v20 = vld [vmem:[%s273_s1 + $0x60] sm:$0xff]  ;;  %v28_v21 = vld [vmem:[%s273_s1 + $0x68] sm:$0xff]  ;;  %v29_v23 = vld [vmem:[%s273_s1 + $0x70] sm:$0xff] }
   0x6   :  { %v185_v22 = vpack.c.bf16 %v28_v21, %v27_v20  ;;  %v30_v24 = vld [vmem:[%s273_s1 + $0x78] sm:$0xff]  ;;  %v14_v26 = vld [vmem:[%s274_s0] sm:$0xff] }
   0x7   :  { %v188_v25 = vpack.c.bf16 %v30_v24, %v29_v23  ;;  %v113_v27 = vld [vmem:[%s275_s2] ss:$0 sm:$0xff] }
   0x8   :  { %171 = vmatpush3.bf16.msra.mxu0 %v170_v7 }
   0x9   :  { %172 = vmatprep.subr.bf16.mxu0 %v193_v0 }
   0xc   :  { %174 = vmatpush3.bf16.msra.mxu0 %v173_v10 }
   0xd   :  { %175 = vmatprep.subr.bf16.mxu0 %v193_v0 }
  0x10   :  { %177 = vmatpush3.bf16.msra.mxu0 %v176_v13 }
  0x11   :  { %178 = vmatprep.subr.bf16.mxu0 %v193_v0 }
  0x14   :  { %180 = vmatpush3.bf16.msra.mxu0 %v179_v16 }
  0x15   :  { %181 = vmatprep.subr.bf16.mxu0 %v193_v0 }
  0x18   :  { %183 = vmatpush3.bf16.msra.mxu0 %v182_v19 }
  0x19   :  { %184 = vmatprep.subr.bf16.mxu0 %v193_v0 }
  0x1c   :  { %186 = vmatpush3.bf16.msra.mxu0 %v185_v22 }
  0x1d   :  { %187 = vmatprep.subr.bf16.mxu0 %v193_v0 }
  0x20   :  { %189 = vmatpush3.bf16.msra.mxu0 %v188_v25 }
  0x23   :  { %164 = vmatmul.mubr.f32.vlgmr.msra.gmra.mrb[0].mxu0 %v14_v26 }
  0xf6   :  { %v104_v28 = vpop.f32.mrb[0].mxu0 }
  0xf7   :  { %v105_v29 = vadd.f32 %v113_v27, %v104_v28  ;;  %v165_v30 = vpop.f32.mrb[1].mxu0 }
  0xf9   :  { %108 = vst [vmem:[%s276_s3] sm:$0xff] %v105_v29 }

</bundles_post_ra>
